<compile_context>
chip_gen: v5e
topology: v5e:2x2
jax: 0.10.0
libtpu: 0.0.40
codegen_flags: <defaults>
</compile_context>

<pallas_src>
import math
import numpy as np
import jax
import jax.numpy as jnp
from jax import lax
from jax.experimental import pallas as pl
from jax.experimental.pallas import tpu as pltpu


def _round_up(x, m):
    return ((x + m - 1) // m) * m


def fov2focal(fov, pixels):
    return pixels / (2.0 * math.tan(fov / 2.0))


# ---------------------------------------------------------------------------
# Kernel 1: per-point rigid transform  (einsum('bnxy,bny->bnx', R, p) + t)
# Packed (16, N) slab: rows 0-2 = xyz, 3-11 = R row-major, 12-14 = t, 15 = pad.
# ---------------------------------------------------------------------------
def _point_transform_kernel(d_ref, o_ref):
    x = d_ref[0:1, :]
    y = d_ref[1:2, :]
    z = d_ref[2:3, :]
    o_ref[0:1, :] = d_ref[3:4, :] * x + d_ref[4:5, :] * y + d_ref[5:6, :] * z + d_ref[12:13, :]
    o_ref[1:2, :] = d_ref[6:7, :] * x + d_ref[7:8, :] * y + d_ref[8:9, :] * z + d_ref[13:14, :]
    o_ref[2:3, :] = d_ref[9:10, :] * x + d_ref[10:11, :] * y + d_ref[11:12, :] * z + d_ref[14:15, :]


def pack_point_data(points, mat):
    """One-time packing of (N,3) points + (N,4,4) transforms into the coordinate-major
    (16, N_pad) slab consumed by transform_points_packed.

    The transposes/concat here are full HBM passes; do this ONCE outside the per-frame
    path (persist the slab upstream) so the streaming kernel below only reads 16N and
    writes 3N floats per call.
    """
    n = points.shape[0]
    p_t = points.T.astype(jnp.float32)                        # (3, N)
    r_t = mat[:, :3, :3].reshape(n, 9).T.astype(jnp.float32)  # (9, N) row-major 3x3
    t_t = mat[:, :3, 3].T.astype(jnp.float32)                 # (3, N)
    packed = jnp.concatenate(
        [p_t, r_t, t_t, jnp.zeros((1, n), jnp.float32)], axis=0)  # (16, N)
    n_al = _round_up(max(n, 1), 128)
    if n_al != n:
        packed = jnp.pad(packed, ((0, 0), (0, n_al - n)))
    return packed


def transform_points_packed(packed, n, tile_n=32768):
    """packed: (16, N_pad) coordinate-major slab, n: number of valid points -> (n, 3)."""
    n_cols = packed.shape[1]
    # Keep >=2 grid steps when the point count allows, so the "parallel" axis can be
    # split across both v7x TensorCores; 32768-point tiles (~2 MiB/block) amortize the
    # ~0.35us per-step overhead while staying under the default scoped-VMEM limit.
    half = max(128, _round_up(-(-n_cols // 2), 128))
    tile_n = max(128, min(_round_up(tile_n, 128), half))
    out_t = pl.pallas_call(
        _point_transform_kernel,
        out_shape=jax.ShapeDtypeStruct((3, n_cols), jnp.float32),
        grid=(pl.cdiv(n_cols, tile_n),),
        in_specs=[pl.BlockSpec((16, tile_n), lambda i: (0, i))],
        out_specs=pl.BlockSpec((3, tile_n), lambda i: (0, i)),
        compiler_params=pltpu.CompilerParams(dimension_semantics=("parallel",)),
    )(packed)
    return out_t[:, :n].T


def transform_points(points, mat, tile_n=32768):
    """Convenience path (packs per call). Prefer pack_point_data once + *_packed."""
    return transform_points_packed(pack_point_data(points, mat), points.shape[0], tile_n)


# ---------------------------------------------------------------------------
# Kernel 2 (fused): normal2curv + normal blend + depth2normal, row-tiled over H.
# ---------------------------------------------------------------------------
def _make_fused_image_kernel(tile_h, w_pad, cx, cy, inv_k00, inv_k11, col_edge):
    th, wp = tile_h, w_pad
    k0, k1 = inv_k00, inv_k11

    def kernel(normal_ref, opac_ref, depth_ref, halo_up_ref, halo_dn_ref,
               curv_ref, nblend_ref, pred_ref):
        i = pl.program_id(0)

        # ---- hoisted, separable index helpers ----
        row = lax.broadcasted_iota(jnp.int32, (th, 1), 0)          # (th, 1)
        col = lax.broadcasted_iota(jnp.int32, (1, wp), 1)          # (1, wp)
        first_row = row == 0
        last_row = row == th - 1
        xgrid = (col.astype(jnp.float32) - cx) * k0                # (1, wp)
        ygrid = ((row + i * th).astype(jnp.float32) - cy) * k1     # (th, 1)

        hu = halo_up_ref[0]   # (5, wp): rows = [normal0, normal1, normal2, opac, depth]
        hd = halo_dn_ref[0]   # image-top / image-bottom halos are zeroed by the wrapper

        opac = opac_ref[0]                              # raw opacity (blend weight)
        m = (opac > 1e-5).astype(jnp.float32)           # binary mask (curv / depth2normal)

        def up(x, halo):       # row above (halo row for the tile's first row)
            return jnp.where(first_row, halo, pltpu.roll(x, 1, 0))

        def down(x, halo):     # row below
            return jnp.where(last_row, halo, pltpu.roll(x, th - 1, 0))

        def left(x):           # bare lane roll: edge handled via the neighbour mask
            return pltpu.roll(x, 1, 1)

        def right(x):
            return pltpu.roll(x, wp - 1, 1)

        mu = up(m, (hu[3:4, :] > 1e-5).astype(jnp.float32))
        mb = down(m, (hd[3:4, :] > 1e-5).astype(jnp.float32))
        ml = left(m)
        mr = right(m)
        if col_edge:
            # W == W_pad: no zero-opacity padded column annihilates the lane wrap, so zero
            # the neighbour MASK at the true image edges (the reference's replicate pad
            # contributes exactly zero there for binary masks -> identical result).
            ml = jnp.where(col == 0, 0.0, ml)
            mr = jnp.where(col == wp - 1, 0.0, mr)
        msum = (mu + ml) + (mb + mr)

        # ---- normal2curv (sign flips cancel under |.|) + rendered-normal blend ----
        half_opac = 0.5 * opac
        one_minus_opac = 1.0 - opac
        curv = None
        for c in range(3):
            nch = normal_ref[c]
            acc = up(nch, hu[c:c + 1, :]) * mu
            acc = acc + left(nch) * ml
            acc = acc + down(nch, hd[c:c + 1, :]) * mb
            acc = acc + right(nch) * mr
            acc = acc - nch * msum
            a = jnp.abs(acc)
            curv = a if curv is None else curv + a
            # reference: flip channels 1,2, then (n+1)/2, blended with the RAW opacity
            if c == 0:
                nblend_ref[c] = (nch + 1.0) * half_opac + one_minus_opac
            else:
                nblend_ref[c] = (1.0 - nch) * half_opac + one_minus_opac
        curv_ref[0] = curv * m

        # ---- depth2normal (separable back-projection + single cross product) ----
        d = depth_ref[0]
        pcz = d * m
        pcx = xgrid * pcz
        pcy = ygrid * pcz

        d_u = up(d, hu[4:5, :])
        d_b = down(d, hd[4:5, :])
        a_ud = d_u * mu
        b_ud = d_b * mb
        s_v = a_ud - b_ud
        t_v = a_ud + b_ud
        dm_v = mu - mb
        du_x = xgrid * s_v - pcx * dm_v
        du_y = (ygrid * s_v - k1 * t_v) - pcy * dm_v
        du_z = s_v - pcz * dm_v

        d_l = left(d)
        d_r = right(d)
        c_lr = d_l * ml
        e_lr = d_r * mr
        s_h = c_lr - e_lr
        t_h = c_lr + e_lr
        dm_h = ml - mr
        dl_x = (xgrid * s_h - k0 * t_h) - pcx * dm_h
        dl_y = ygrid * s_h - pcy * dm_h
        dl_z = s_h - pcz * dm_h

        # n = (p_u - p_b) x (p_l - p_r)  ==  n_ul + n_ur + n_br + n_bl  (bilinearity)
        nx = du_y * dl_z - du_z * dl_y
        ny = du_z * dl_x - du_x * dl_z
        nz = du_x * dl_y - du_y * dl_x

        inv = lax.rsqrt(jnp.maximum(nx * nx + ny * ny + nz * nz, 1e-24))  # EUP slot
        inv_m = inv * m
        pred_ref[0] = (nx * inv_m + 1.0) * 0.5
        pred_ref[1] = (1.0 - ny * inv_m) * 0.5      # channel 1 flipped
        pred_ref[2] = (1.0 - nz * inv_m) * 0.5      # channel 2 flipped

    return kernel


def fused_image_kernels(rendered_normal, rendered_opac, rendered_depth, camera, tile_h=128):
    """Returns (curv (1,H,W), blended normal (3,H,W), pred_normal (3,H,W)).

    tile_h: rows per grid step (multiple of 8).  The default 128 fits the explicit 64 MiB
    VMEM limit on all generations for W_pad <= ~2048; it is clamped so that the parallel
    grid axis has >= 2 steps when H allows (v7x two-TensorCore split).
    """
    _, h, w = rendered_normal.shape
    w_pad = _round_up(w, 128)
    tile_h = max(8, _round_up(min(tile_h, _round_up(h, 8)), 8))
    if h > 8:
        tile_h = min(tile_h, _round_up(-(-h // 2), 8))
    h_pad = _round_up(h, tile_h)
    n_tiles = h_pad // tile_h

    # pad only when needed (padded rows/cols carry opac==0 -> mask 0 -> zero contribution)
    if h_pad != h or w_pad != w:
        def pad_img(x):
            return jnp.pad(x, ((0, 0), (0, h_pad - h), (0, w_pad - w)))
    else:
        def pad_img(x):
            return x

    normal_p = pad_img(rendered_normal)
    opac_p = pad_img(rendered_opac)
    depth_p = pad_img(rendered_depth)

    # per-tile halo rows (row above / below each tile); gathered per channel so no full
    # 5-channel HBM concat is materialized.  Halos outside the real image are zeroed,
    # which reproduces the reference's replicate pad exactly for binary masks.
    tids = np.arange(n_tiles)
    above_idx = np.maximum(tids * tile_h - 1, 0)
    below_idx = np.minimum((tids + 1) * tile_h, h_pad - 1)
    valid_up = (tids > 0).astype(np.float32).reshape(n_tiles, 1, 1)
    valid_dn = ((tids + 1) * tile_h < h).astype(np.float32).reshape(n_tiles, 1, 1)

    def gather_rows(img, idx):
        return jnp.transpose(img[:, idx, :], (1, 0, 2))          # (n_tiles, C, w_pad)

    halo_up = jnp.concatenate(
        [gather_rows(normal_p, above_idx),
         gather_rows(opac_p, above_idx),
         gather_rows(depth_p, above_idx)], axis=1) * valid_up     # (n_tiles, 5, w_pad)
    halo_dn = jnp.concatenate(
        [gather_rows(normal_p, below_idx),
         gather_rows(opac_p, below_idx),
         gather_rows(depth_p, below_idx)], axis=1) * valid_dn

    cx = float(camera["prcppoint"][0]) * float(camera["image_width"])
    cy = float(camera["prcppoint"][1]) * float(camera["image_height"])
    # NOTE: matches the reference exactly: x is divided by fov2focal(FoVy, H),
    #       y by fov2focal(FoVx, W)  (K = [[K00,0],[0,K11]] with that swap).
    inv_k00 = 1.0 / fov2focal(camera["FoVy"], camera["image_height"])
    inv_k11 = 1.0 / fov2focal(camera["FoVx"], camera["image_width"])

    kernel = _make_fused_image_kernel(tile_h, w_pad, cx, cy, inv_k00, inv_k11,
                                      col_edge=(w == w_pad))

    curv, nblend, pred = pl.pallas_call(
        kernel,
        out_shape=(
            jax.ShapeDtypeStruct((1, h_pad, w_pad), jnp.float32),
            jax.ShapeDtypeStruct((3, h_pad, w_pad), jnp.float32),
            jax.ShapeDtypeStruct((3, h_pad, w_pad), jnp.float32),
        ),
        grid=(n_tiles,),
        in_specs=[
            pl.BlockSpec((3, tile_h, w_pad), lambda i: (0, i, 0)),
            pl.BlockSpec((1, tile_h, w_pad), lambda i: (0, i, 0)),
            pl.BlockSpec((1, tile_h, w_pad), lambda i: (0, i, 0)),
            pl.BlockSpec((1, 5, w_pad), lambda i: (i, 0, 0)),
            pl.BlockSpec((1, 5, w_pad), lambda i: (i, 0, 0)),
        ],
        out_specs=(
            pl.BlockSpec((1, tile_h, w_pad), lambda i: (0, i, 0)),
            pl.BlockSpec((3, tile_h, w_pad), lambda i: (0, i, 0)),
            pl.BlockSpec((3, tile_h, w_pad), lambda i: (0, i, 0)),
        ),
        compiler_params=pltpu.CompilerParams(
            dimension_semantics=("parallel",),
            vmem_limit_bytes=64 * 1024 * 1024),
    )(normal_p, opac_p, depth_p, halo_up, halo_dn)

    if h_pad != h or w_pad != w:
        return curv[:, :h, :w], nblend[:, :h, :w], pred[:, :h, :w]
    return curv, nblend, pred


# ---------------------------------------------------------------------------
# Forward wrapper mirroring DiffGaussianRasterizer.forward (stage 0, offset=False)
# ---------------------------------------------------------------------------
def diff_gaussian_rasterizer_forward(pc, camera, bg_color, rasterized):
    points = pc["xyz"]                 # (N, 3)
    n = points.shape[0]

    packed = pc.get("packed_points16")
    if packed is None:                 # fallback: per-call packing (extra HBM passes)
        packed = pack_point_data(points, pc["smpl_mat"])

    # points = einsum('bnxy,bny->bnx', mat[...,:3,:3], points) + mat[...,:3,3]   (Pallas)
    means3D = transform_points_packed(packed, n)

    # TODO(synk): quaternion_to_matrix / matrix_to_quaternion rotation update and the CUDA
    # gaussian-splatting rasterizer have no Pallas/TPU equivalent; rendered buffers come in.
    screenspace_points = jnp.zeros_like(points)

    rendered_image = rasterized["image"]     # (3, H, W)
    rendered_normal = rasterized["normal"]   # (3, H, W) raw (pre sign-flip)
    rendered_depth = rasterized["depth"]     # (1, H, W)
    rendered_opac = rasterized["opac"]       # (1, H, W)
    rendered_occ = rasterized["occ"]         # (3, H, W)
    radii = rasterized["radii"]              # (N,)

    curv, normal_out, pred_normal = fused_image_kernels(
        rendered_normal, rendered_opac, rendered_depth, camera)

    return {
        "render": rendered_image,
        "normal": normal_out,
        "depth": rendered_depth,
        "pred_normal": pred_normal,
        "mask": rendered_opac,
        "occ": rendered_occ,
        "curv": curv,
        "viewspace_points": screenspace_points,
        "visibility_filter": radii > 0,
        "radii": radii,
        "means3D": means3D,
    }


# ---------------------------------------------------------------------------
# Plain-JAX mirror of the PyTorch reference (normal2curv / blend / depth2normal)
# used only for numeric validation in __main__.
# ---------------------------------------------------------------------------
def _ref_outputs(normal, opac, depth, camera):
    mask_b = (opac > 1e-5).astype(jnp.float32)
    flip = jnp.array([1.0, -1.0, -1.0], jnp.float32).reshape(3, 1, 1)
    n_flip = normal * flip

    n_hwc = jnp.transpose(n_flip, (1, 2, 0))
    m_hwc = jnp.transpose(mask_b, (1, 2, 0))
    n_p = jnp.pad(n_hwc, ((1, 1), (1, 1), (0, 0)), mode="edge")
    m_p = jnp.pad(m_hwc, ((1, 1), (1, 1), (0, 0)), mode="edge")
    n_c = n_p[1:-1, 1:-1] * m_p[1:-1, 1:-1]
    n_u = (n_p[:-2, 1:-1] - n_c) * m_p[:-2, 1:-1]
    n_l = (n_p[1:-1, :-2] - n_c) * m_p[1:-1, :-2]
    n_b = (n_p[2:, 1:-1] - n_c) * m_p[2:, 1:-1]
    n_r = (n_p[1:-1, 2:] - n_c) * m_p[1:-1, 2:]
    curv = jnp.transpose(n_u + n_l + n_b + n_r, (2, 0, 1)) * mask_b
    curv = jnp.sum(jnp.abs(curv), axis=0, keepdims=True)

    nblend = (n_flip + 1.0) * 0.5 * opac + (1.0 - opac)

    h, w = depth.shape[1], depth.shape[2]
    cx = camera["prcppoint"][0] * camera["image_width"]
    cy = camera["prcppoint"][1] * camera["image_height"]
    k00 = fov2focal(camera["FoVy"], camera["image_height"])
    k11 = fov2focal(camera["FoVx"], camera["image_width"])
    d_hwc = jnp.transpose(depth, (1, 2, 0))
    hi = jnp.arange(h, dtype=jnp.float32).reshape(h, 1, 1)
    wi = jnp.arange(w, dtype=jnp.float32).reshape(1, w, 1)
    px = (wi - cx) * d_hwc / k00
    py = (hi - cy) * d_hwc / k11
    p = jnp.concatenate([px, py, d_hwc], axis=-1)
    p_pad = jnp.pad(p, ((1, 1), (1, 1), (0, 0)), mode="edge")
    p_c = p_pad[1:-1, 1:-1] * m_p[1:-1, 1:-1]
    p_u = (p_pad[:-2, 1:-1] - p_c) * m_p[:-2, 1:-1]
    p_l = (p_pad[1:-1, :-2] - p_c) * m_p[1:-1, :-2]
    p_b = (p_pad[2:, 1:-1] - p_c) * m_p[2:, 1:-1]
    p_r = (p_pad[1:-1, 2:] - p_c) * m_p[1:-1, 2:]
    nvec = (jnp.cross(p_u, p_l) + jnp.cross(p_r, p_u)
            + jnp.cross(p_b, p_r) + jnp.cross(p_l, p_b))
    nn = jnp.sqrt(jnp.sum(nvec * nvec, axis=-1, keepdims=True))
    nvec = nvec / jnp.maximum(nn, 1e-12) * m_hwc
    dn = jnp.transpose(nvec, (2, 0, 1)) * flip
    pred = (dn + 1.0) * 0.5
    return curv, nblend, pred, jnp.transpose(nn, (2, 0, 1))


def _check_image_outputs(normal, opac, depth, camera, **kwargs):
    curv, nblend, pred = fused_image_kernels(normal, opac, depth, camera, **kwargs)
    rcurv, rnblend, rpred, rnorm = _ref_outputs(normal, opac, depth, camera)
    assert float(jnp.max(jnp.abs(curv - rcurv))) < 1e-4, "curv mismatch"
    assert float(jnp.max(jnp.abs(nblend - rnblend))) < 1e-5, "normal blend mismatch"
    err = jnp.abs(pred - rpred)
    well = rnorm > 1e-3   # exclude numerically ill-conditioned (near-zero cross) pixels
    assert float(jnp.max(jnp.where(well, err, 0.0))) < 2e-3, "pred_normal mismatch"
    assert float(jnp.mean(err)) < 1e-4, "pred_normal mean mismatch"


if __name__ == "__main__":
    key = jax.random.PRNGKey(0)
    # Small shapes; W=96 exercises the lane-padding path, H=32 with the auto tile_h=16
    # exercises the multi-tile halo path; a second config covers W%128==0 + row padding.
    N, H, W = 1000, 32, 96
    ks = jax.random.split(key, 10)

    points = jax.random.normal(ks[0], (N, 3), jnp.float32)
    mat = jax.random.normal(ks[1], (N, 4, 4), jnp.float32) * 0.1 + jnp.eye(4, dtype=jnp.float32)
    packed = pack_point_data(points, mat)   # one-time packing (persist upstream in practice)
    pc = {"xyz": points, "smpl_mat": mat, "packed_points16": packed}

    camera = {
        "image_height": H,
        "image_width": W,
        "FoVx": math.radians(60.0),
        "FoVy": math.radians(50.0),
        "prcppoint": (0.5, 0.5),
    }

    opac_raw = jax.random.uniform(ks[5], (1, H, W), jnp.float32)
    opac = jnp.where(jax.random.uniform(ks[6], (1, H, W), jnp.float32) > 0.3, opac_raw, 0.0)
    rasterized = {
        "image": jax.random.uniform(ks[2], (3, H, W), jnp.float32),
        "normal": jax.random.uniform(ks[3], (3, H, W), jnp.float32, minval=-1.0, maxval=1.0),
        "depth": jax.random.uniform(ks[4], (1, H, W), jnp.float32, minval=0.5, maxval=3.0),
        "opac": opac,
        "occ": jax.random.uniform(ks[7], (3, H, W), jnp.float32),
        "radii": jax.random.randint(ks[8], (N,), 0, 10),
    }
    bg_color = jnp.ones((3,), jnp.float32)

    out = diff_gaussian_rasterizer_forward(pc, camera, bg_color, rasterized)
    jax.block_until_ready(out)

    # ---- numeric validation against a plain-JAX mirror of the PyTorch reference ----
    ref_means = jnp.einsum("nij,nj->ni", mat[:, :3, :3], points) + mat[:, :3, 3]
    assert float(jnp.max(jnp.abs(out["means3D"] - ref_means))) < 1e-4, "means3D mismatch"

    _check_image_outputs(rasterized["normal"], rasterized["opac"], rasterized["depth"], camera)

    # W a multiple of 128 (column-edge masking load-bearing) + H not a multiple of tile_h.
    H2, W2 = 24, 128
    k2 = jax.random.split(ks[9], 4)
    camera2 = dict(camera, image_height=H2, image_width=W2)
    normal2 = jax.random.uniform(k2[0], (3, H2, W2), jnp.float32, minval=-1.0, maxval=1.0)
    depth2 = jax.random.uniform(k2[1], (1, H2, W2), jnp.float32, minval=0.5, maxval=3.0)
    opac2 = jnp.where(jax.random.uniform(k2[3], (1, H2, W2), jnp.float32) > 0.3,
                      jax.random.uniform(k2[2], (1, H2, W2), jnp.float32), 0.0)
    _check_image_outputs(normal2, opac2, depth2, camera2)

    print("KERNEL_OK")
</pallas_src>

<mosaic_0001>
module attributes {stable_mosaic.version = 11 : i64} {
  func.func @_point_transform_kernel(%arg0: i32, %arg1: memref<16x512xf32, #tpu.memory_space<vmem>>, %arg2: memref<3x512xf32, #tpu.memory_space<vmem>>) attributes {dimension_semantics = [#tpu.dimension_semantics<parallel>], iteration_bounds = array<i64: 2>, scalar_prefetch = 0 : i64, scratch_operands = 0 : i64, tpu.core_type = #tpu.core_type<tc>, window_params = [{transform_indices = @transform_0, window_bounds = array<i64: 16, 512>}, {transform_indices = @transform_1, window_bounds = array<i64: 3, 512>}]} {
    %c0 = arith.constant 0 : index
    %c0_0 = arith.constant 0 : index
    %0 = vector.load %arg1[%c0, %c0_0] : memref<16x512xf32, #tpu.memory_space<vmem>>, vector<1x512xf32>
    %c1 = arith.constant 1 : index
    %c0_1 = arith.constant 0 : index
    %1 = vector.load %arg1[%c1, %c0_1] : memref<16x512xf32, #tpu.memory_space<vmem>>, vector<1x512xf32>
    %c2 = arith.constant 2 : index
    %c0_2 = arith.constant 0 : index
    %2 = vector.load %arg1[%c2, %c0_2] : memref<16x512xf32, #tpu.memory_space<vmem>>, vector<1x512xf32>
    %c3 = arith.constant 3 : index
    %c0_3 = arith.constant 0 : index
    %3 = vector.load %arg1[%c3, %c0_3] : memref<16x512xf32, #tpu.memory_space<vmem>>, vector<1x512xf32>
    %4 = arith.mulf %3, %0 : vector<1x512xf32>
    %c4 = arith.constant 4 : index
    %c0_4 = arith.constant 0 : index
    %5 = vector.load %arg1[%c4, %c0_4] : memref<16x512xf32, #tpu.memory_space<vmem>>, vector<1x512xf32>
    %6 = arith.mulf %5, %1 : vector<1x512xf32>
    %7 = arith.addf %4, %6 : vector<1x512xf32>
    %c5 = arith.constant 5 : index
    %c0_5 = arith.constant 0 : index
    %8 = vector.load %arg1[%c5, %c0_5] : memref<16x512xf32, #tpu.memory_space<vmem>>, vector<1x512xf32>
    %9 = arith.mulf %8, %2 : vector<1x512xf32>
    %10 = arith.addf %7, %9 : vector<1x512xf32>
    %c12 = arith.constant 12 : index
    %c0_6 = arith.constant 0 : index
    %11 = vector.load %arg1[%c12, %c0_6] : memref<16x512xf32, #tpu.memory_space<vmem>>, vector<1x512xf32>
    %12 = arith.addf %10, %11 : vector<1x512xf32>
    %c0_7 = arith.constant 0 : index
    %c0_8 = arith.constant 0 : index
    %13 = vector.load %arg2[%c0_7, %c0_8] : memref<3x512xf32, #tpu.memory_space<vmem>>, vector<1x512xf32>
    tpu.vector_store %arg2[%c0_7, %c0_8], %12 {strides = array<i32>} : memref<3x512xf32, #tpu.memory_space<vmem>>, vector<1x512xf32>,
    %c6 = arith.constant 6 : index
    %c0_9 = arith.constant 0 : index
    %14 = vector.load %arg1[%c6, %c0_9] : memref<16x512xf32, #tpu.memory_space<vmem>>, vector<1x512xf32>
    %15 = arith.mulf %14, %0 : vector<1x512xf32>
    %c7 = arith.constant 7 : index
    %c0_10 = arith.constant 0 : index
    %16 = vector.load %arg1[%c7, %c0_10] : memref<16x512xf32, #tpu.memory_space<vmem>>, vector<1x512xf32>
    %17 = arith.mulf %16, %1 : vector<1x512xf32>
    %18 = arith.addf %15, %17 : vector<1x512xf32>
    %c8 = arith.constant 8 : index
    %c0_11 = arith.constant 0 : index
    %19 = vector.load %arg1[%c8, %c0_11] : memref<16x512xf32, #tpu.memory_space<vmem>>, vector<1x512xf32>
    %20 = arith.mulf %19, %2 : vector<1x512xf32>
    %21 = arith.addf %18, %20 : vector<1x512xf32>
    %c13 = arith.constant 13 : index
    %c0_12 = arith.constant 0 : index
    %22 = vector.load %arg1[%c13, %c0_12] : memref<16x512xf32, #tpu.memory_space<vmem>>, vector<1x512xf32>
    %23 = arith.addf %21, %22 : vector<1x512xf32>
    %c1_13 = arith.constant 1 : index
    %c0_14 = arith.constant 0 : index
    %24 = vector.load %arg2[%c1_13, %c0_14] : memref<3x512xf32, #tpu.memory_space<vmem>>, vector<1x512xf32>
    tpu.vector_store %arg2[%c1_13, %c0_14], %23 {strides = array<i32>} : memref<3x512xf32, #tpu.memory_space<vmem>>, vector<1x512xf32>,
    %c9 = arith.constant 9 : index
    %c0_15 = arith.constant 0 : index
    %25 = vector.load %arg1[%c9, %c0_15] : memref<16x512xf32, #tpu.memory_space<vmem>>, vector<1x512xf32>
    %26 = arith.mulf %25, %0 : vector<1x512xf32>
    %c10 = arith.constant 10 : index
    %c0_16 = arith.constant 0 : index
    %27 = vector.load %arg1[%c10, %c0_16] : memref<16x512xf32, #tpu.memory_space<vmem>>, vector<1x512xf32>
    %28 = arith.mulf %27, %1 : vector<1x512xf32>
    %29 = arith.addf %26, %28 : vector<1x512xf32>
    %c11 = arith.constant 11 : index
    %c0_17 = arith.constant 0 : index
    %30 = vector.load %arg1[%c11, %c0_17] : memref<16x512xf32, #tpu.memory_space<vmem>>, vector<1x512xf32>
    %31 = arith.mulf %30, %2 : vector<1x512xf32>
    %32 = arith.addf %29, %31 : vector<1x512xf32>
    %c14 = arith.constant 14 : index
    %c0_18 = arith.constant 0 : index
    %33 = vector.load %arg1[%c14, %c0_18] : memref<16x512xf32, #tpu.memory_space<vmem>>, vector<1x512xf32>
    %34 = arith.addf %32, %33 : vector<1x512xf32>
    %c2_19 = arith.constant 2 : index
    %c0_20 = arith.constant 0 : index
    %35 = vector.load %arg2[%c2_19, %c0_20] : memref<3x512xf32, #tpu.memory_space<vmem>>, vector<1x512xf32>
    tpu.vector_store %arg2[%c2_19, %c0_20], %34 {strides = array<i32>} : memref<3x512xf32, #tpu.memory_space<vmem>>, vector<1x512xf32>,
    return
  }
  func.func @transform_0(%arg0: i32) -> (i32, i32) {
    %c0_i32 = arith.constant 0 : i32
    %c0_i32_0 = arith.constant 0 : i32
    return %c0_i32, %arg0 : i32, i32
  }
  func.func @transform_1(%arg0: i32) -> (i32, i32) {
    %c0_i32 = arith.constant 0 : i32
    %c0_i32_0 = arith.constant 0 : i32
    return %c0_i32, %arg0 : i32, i32
  }
}

</mosaic_0001>

<bundles_post_ra>
// kernel: tpu_custom_call.1
= control target key start
LH: loop header
LB: loop body
LE: loop exit
PB: predicated region body
PF: predicated region fallthrough
CT: control target
= control target key end

     0   :  { %6 = vsyncpa [#allocation3], 0  ;;  %s627_s0 = inlined_call_operand.hbm [shape: f32[16,1024], index: 0, kind: input, shape index: {}]   ;;  %s628_s1 = inlined_call_operand.hbm [shape: f32[3,1024], index: 1, kind: output, shape index: {}]  }
   0x1   :  { %8 = vsyncpa [#allocation3 + $0x1], 0 }
   0x2   :  { %9 = vsyncpa [#allocation4], 0 }
   0x3   :  { %11 = vsyncpa [#allocation4 + $0x1], 0  ;;  %s474_s6 = smov 0   ;;  %s476_s7 = smov 0  }
   0x4   :  { %s478_s8 = smov 0   ;;  %s480_s9 = smov 0  }
   0x5 LB: > { %s495_s10 = sadd.s32 4294967295, %s459_s9   ;;  %s282_s11 = sadd.s32 4294967294, %s459_s9   ;;  %s459_s9 = sphi %s480_s9, %s639_s9   ;;  %s455_s8 = sphi %s478_s8, %s638_s8   ;;  %s451_s7 = sphi %s476_s7, %s637_s7   ;;  %s447_s6 = sphi %s474_s6, %s636_s6  }
   0x6   : > { %s499_s12 = sadd.s32 1, %s459_s9   ;;  %s24_s13 = sadd.s32 1, %s455_s8 }
   0x7   : > { %s21_s14 = ssub.s32 %s459_s9, %s499_s12  ;;  %p31_p0 = scmp.ne.s32.totalorder %s455_s8, %s451_s7 }
   0x8   : > { %p22_p1 = scmp.eq.s32.totalorder %s21_s14, 0  ;;  %p32_p2 = scmp.eq.s32.totalorder %s459_s9, 0 }
   0x9   : > { %p37_p3 = scmp.ne.s32.totalorder %s451_s7, %s447_s6  ;;  %p38_p4 = scmp.eq.s32.totalorder %s495_s10, 0 }
   0xa   : > { %s511_s15 = scalar_select %p22_p1, %s455_s8, %s24_s13  }
   0xb   : > { %p513_p5 = por %p32_p2, %p31_p0  ;;  %p517_p6 = por %p38_p4, %p37_p3 }
   0xc   : > { %p61_p7 = scmp.eq.s32.totalorder %s495_s10, 1  ;;  %p67_p8 = scmp.eq.s32.totalorder %s282_s11, 1 }
   0xd   : > { %p284_p9 = scmp.ge.s32.totalorder %s459_s9, 2  ;;  %p326_p10 = scmp.lt.s32.totalorder %s459_s9, 2 }
   0xe   : > { %p524_p11 = por %p61_p7, %p31_p0  ;;  %p528_p12 = por %p67_p8, %p37_p3 }
   0xf   : > { %s87_s20 = sand.u32 1, %s455_s8   ;;  %s312_s21 = sshll.u32 %s459_s9, 5 }
  0x10   : > { %s285_s22 = sshll.u32 %s87_s20, 6  ;;  %s96_s25 = scalar_lea.hbm %s627_s0, %s312_s21 }
  0x11   : > { %s97_s26 = sshll.u32 %s96_s25, 4  ;;  %s91_s27 = scalar_lea.vmem [#allocation2], %s285_s22  ;;  %s98_s26 = int_to_ptr.hbm [resolvable:$true] %s97_s26 }
  0x12   : > { %s99_s28 = sshll.u32 %s91_s27, 4  ;;  %p539_p13 = pnand %p326_p10, %p513_p5  ;;  %s100_s28 = int_to_ptr.vmem [resolvable:$true] %s99_s28 }
  0x13   : > { %p288_p0 = scmp.ge.s32.totalorder %s459_s9, 1  ;;  %s88_s30 = scalar_lea.sflag [#allocation3], %s87_s20 }
  0x14   : > { %s363_s2 = sshra.s32 %s98_s26, 4  ;;  %p367_p2 = pneg %p539_p13  ;;  %s364_s2 = int_to_ptr.hbm [resolvable:$true] %s363_s2 }
  0x15   : > { %s365_s3 = scalar_lea.hbm %s364_s2, 64  ;;  %s370_s11 = scalar_lea.hbm %s627_s0, 128 }
  0x16   : > { %p366_p1 = scmp.ne.s32.totalorder %s364_s2, %s365_s3  ;;  %p371_p5 = scmp.lt.s32.totalorder %s364_s2, %s627_s0 }
  0x17   : > { %p372_p7 = scmp.lt.s32.totalorder %s370_s11, %s365_s3 }
  0x18   : > { %p368_p3 = pnand %p367_p2, %p366_p1 }
  0x19   : > { %p373_p8 = por %p372_p7, %p371_p5 }
  0x1a   : > { %p369_p4 = pneg %p368_p3 }
  0x1c   : > { %p374_p10 = pnand %p373_p8, %p369_p4 }
  0x1e   : > { %377 = shalt.err (!%p374_p10)
}
  0x1f   : > { %s461_s16 = smov 1024   ;;  %s462_s20 = smov 512  }
  0x20   : > { %s463_s21 = smov 32   ;;  %p107_p1 = scmp.lt.s32.totalorder %s459_s9, 3 }
  0x21   : > { %321 = dma.hbm_to_vmem [thread:$0]  (!%p539_p13), %s98_s26, 1024, %s100_s28, %s88_s30, %s461_s16, %s462_s20, %s463_s21  }
  0x22   : > { %p108_p2 = pnand %p288_p0, %p107_p1 }
  0x23   : > { %s558_s22 = sand.u32 (!%p108_p2), 1, %s451_s7  }
  0x24   : > { %111 = sbr.rel (%p108_p2) target bundleno = 63 (0x3f), region = 24  ;;  %s289_s23 = sshll.u32 (!%p108_p2), %s558_s22, 6 }
  0x25   : > { %s114_s24 = scalar_lea.sflag (!%p108_p2), [#allocation3], %s558_s22  ;;  %s562_s25 = scalar_lea.vmem (!%p108_p2), [#allocation2], %s289_s23 }
  0x29   : > { %438 = dma.done.wait (%p517_p6), %s114_s24, 1024  }
  0x2a   : > { %440 = vsyncadd (%p517_p6), %s114_s24, 4294966272  ;;  %v139_v0 = vld [vmem:[%s562_s25] ss:$8 sm:$0xf]  ;;  %s290_s17 = sshll.u32 %s558_s22, 4  ;;  %s313_s26 = sshll.u32 %s495_s10, 4  ;;  %v158_v10 = vlaneseq }
  0x2b   : > { %v291_v1 = vld [vmem:[%s562_s25 + $0x1] ss:$8 sm:$0xf]  ;;  %v292_v2 = vld [vmem:[%s562_s25 + $0x2] ss:$8 sm:$0xf]  ;;  %s207_s28 = scalar_lea.hbm %s628_s1, %s313_s26 }
  0x2c   : > { %v293_v3 = vld [vmem:[%s562_s25 + $0x3] ss:$8 sm:$0xf]  ;;  %v294_v5 = vld [vmem:[%s562_s25 + $0x4] ss:$8 sm:$0xf] }
  0x2d   : > { %v146_v4 = vmul.f32 %v293_v3, %v139_v0  ;;  %v295_v6 = vld [vmem:[%s562_s25 + $0x5] ss:$8 sm:$0xf]  ;;  %v149_v7 = vmul.f32 %v294_v5, %v291_v1  ;;  %v297_v9 = vld [vmem:[%s562_s25 + $0x6] ss:$8 sm:$0xf] }
  0x2e   : > { %v153_v8 = vmul.f32 %v295_v6, %v292_v2  ;;  %v165_v11 = vmul.f32 %v297_v9, %v139_v0  ;;  %v298_v12 = vld [vmem:[%s562_s25 + $0x7] ss:$8 sm:$0xf]  ;;  %v299_v13 = vld [vmem:[%s562_s25 + $0x20] ss:$8 sm:$0xf] }
  0x2f   : > { %v150_v14 = vadd.f32 %v149_v7, %v146_v4  ;;  %v296_v15 = vld [vmem:[%s562_s25 + $0x24] ss:$8 sm:$0xf]  ;;  %v168_v16 = vmul.f32 %v298_v12, %v291_v1  ;;  %v172_v17 = vmul.f32 %v299_v13, %v292_v2  ;;  %v302_v18 = vld [vmem:[%s562_s25 + $0x21] ss:$8 sm:$0xf] }
  0x30   : > { %v181_v19 = vmul.f32 %v302_v18, %v139_v0  ;;  %v303_v20 = vld [vmem:[%s562_s25 + $0x22] ss:$8 sm:$0xf]  ;;  %v304_v21 = vld [vmem:[%s562_s25 + $0x23] ss:$8 sm:$0xf] }
  0x31   : > { %v154_v22 = vadd.f32 %v153_v8, %v150_v14  ;;  %v169_v23 = vadd.f32 %v168_v16, %v165_v11  ;;  %v184_v24 = vmul.f32 %v303_v20, %v291_v1  ;;  %v188_v25 = vmul.f32 %v304_v21, %v292_v2  ;;  %v300_v27 = vld [vmem:[%s562_s25 + $0x25] ss:$8 sm:$0xf]  ;;  %s136_s29 = scalar_lea.vmem [#allocation5], %s290_s17  ;;  %s211_s2 = sshll.u32 %s207_s28, 4  ;;  %s212_s2 = int_to_ptr.hbm [resolvable:$true] %s211_s2 }
  0x32   : > { %vm586_vm0 = vcmp.lt.s32.totalorder %v158_v10, 512  ;;  %s209_s30 = sshll.u32 %s136_s29, 4  ;;  %v305_v31 = vld [vmem:[%s562_s25 + $0x26] ss:$8 sm:$0xf]  ;;  %s196_s3 = scalar_lea.sflag [#allocation4], %s558_s22  ;;  %s210_s30 = int_to_ptr.vmem [resolvable:$true] %s209_s30 }
  0x33   : > { %v157_v28 = vadd.f32 %v296_v15, %v154_v22  ;;  %v173_v29 = vadd.f32 %v172_v17, %v169_v23  ;;  %v185_v30 = vadd.f32 %v184_v24, %v181_v19  ;;  %s407_s4 = sshra.s32 %s212_s2, 4  ;;  %s413_s14 = scalar_lea.hbm %s628_s1, 32  ;;  %s408_s4 = int_to_ptr.hbm [resolvable:$true] %s407_s4 }
  0x34   : > { %s409_s5 = scalar_lea.hbm %s408_s4, 16  ;;  %p414_p3 = scmp.lt.s32.totalorder %s408_s4, %s628_s1 }
  0x35   : > { %162 = vst.msk [vmem:[%s136_s29] ss:$4 sm:$0xf] %vm586_vm0, %v157_v28  ;;  %v176_v32 = vadd.f32 %v300_v27, %v173_v29  ;;  %v189_v33 = vadd.f32 %v188_v25, %v185_v30  ;;  %p410_p6 = scmp.ne.s32.totalorder %s408_s4, %s409_s5  ;;  %p415_p4 = scmp.lt.s32.totalorder %s413_s14, %s409_s5 }
  0x37   : > { %301 = vst.msk [vmem:[%s136_s29 + $0x1] ss:$4 sm:$0xf] %vm586_vm0, %v176_v32  ;;  %v192_v34 = vadd.f32 %v305_v31, %v189_v33  ;;  %p411_p13 = pnand %p410_p6, %p524_p11  ;;  %p416_p5 = por %p415_p4, %p414_p3 }
  0x39   : > { %306 = vst.msk [vmem:[%s136_s29 + $0x2] ss:$4 sm:$0xf] %vm586_vm0, %v192_v34  ;;  %p412_p0 = pneg %p411_p13 }
  0x3b   : > { %p417_p7 = pnand %p416_p5, %p412_p0 }
  0x3d   : > { %420 = shalt.err (!%p417_p7)
}
  0x3e   : > { %316 = dma.vmem_to_hbm [thread:$0]  (%p524_p11), %s210_s30, 256, %s212_s2, %s196_s3  }
  0x3f PF: > { %s223_s21 = sand.u32 1, %s447_s6   ;;  %p323_p8 = pnand %p284_p9, %p528_p12 }
  0x40   : > { %s224_s22 = scalar_lea.sflag [#allocation4], %s223_s21 }
  0x41   : > { %p324_p10 = pneg %p323_p8 }
  0x43   : > { %442 = dma.done.wait (%p324_p10), %s224_s22, 256  }
  0x44   : > { %444 = vsyncadd (%p324_p10), %s224_s22, 4294967040  ;;  %p14_p1 = scmp.ge.s32.totalorder %s499_s12, 4   ;;  %s636_s6 = smov %s451_s7 }
  0x45   : > { %s637_s7 = smov %s455_s8  ;;  %s638_s8 = smov %s511_s15 }
  0x46   : > { %s639_s9 = smov %s499_s12  ;;  %16 = sbr.rel (!%p14_p1) target bundleno = 5 (0x5), region = 85 }
  0x4b   :  { %230 = vsyncpa [#allocation3], 1 }
  0x4c   :  { %232 = vsyncpa [#allocation3 + $0x1], 1 }
  0x4d   :  { %233 = vsyncpa [#allocation4], 1 }
  0x4e   :  { %235 = vsyncpa [#allocation4 + $0x1], 1 }

</bundles_post_ra>
